<compile_context>
chip_gen: v5e
topology: v5e:2x2
jax: 0.10.0
libtpu: 0.0.40
codegen_flags: <defaults>
</compile_context>

<pallas_src>
import math

import jax
import jax.numpy as jnp
from jax.experimental import pallas as pl
from jax.experimental.pallas import tpu as pltpu


def _cdiv(a, b):
    return -(-a // b)


def _round_up(a, b):
    return _cdiv(a, b) * b


def se_module_combine_v2(x, w1f, w2f, w1t, w2t, w1c, w2c):
    """x: (B, C, H, W). w*: (out, in) weights of the bias-free 1x1 convs."""
    B, C, H, W = x.shape
    HW = H * W
    WpH = W + H
    assert w1f.shape == (W, W) and w2f.shape == (W, W)
    assert w1t.shape == (H, H) and w2t.shape == (H, H)
    assert w1c.shape == (C, C) and w2c.shape == (C, C)

    dtype = x.dtype
    itemsize = jnp.dtype(dtype).itemsize
    f32 = jnp.float32

    # ---- fused constant weights (built once in the wrapper) -----------------
    hw_i = jnp.arange(HW)
    w_idx = hw_i % W            # lane -> freq index
    h_idx = hw_i // W           # lane -> time index

    w1f_t = w1f.T.astype(f32); w2f_t = w2f.T.astype(f32)
    w1t_t = w1t.T.astype(f32); w2t_t = w2t.T.astype(f32)
    w1c_t = w1c.T.astype(f32); w2c_t = w2c.T.astype(f32)

    # fc1 with the mean-pooling over (C,H) / (C,W) folded in (kernel feeds the
    # raw sum over the C rows of a batch, hence the extra 1/C).
    w1_ft = jnp.concatenate([w1f_t[w_idx, :] / (C * H),
                             w1t_t[h_idx, :] / (C * W)], axis=1)        # (HW, W+H)
    # fc2 with the 0/1 broadcast-to-lane selection folded in; block-diagonal so
    # freq and time run as a single matmul.  Each output lane selects exactly
    # one logit, so sigmoid commutes with this broadcast.
    w2_ft = jnp.zeros((WpH, 2 * HW), f32)
    w2_ft = w2_ft.at[:W, :HW].set(w2f_t[:, w_idx])
    w2_ft = w2_ft.at[W:, HW:].set(w2t_t[:, h_idx])
    # channel fc1 with the 1/HW mean folded in (its kernel input is a raw sum).
    w1_c = w1c_t / HW                                                   # (C, C)
    w2_c = w2c_t                                                        # (C, C)

    # Pack all feature-space weights into one operand, 8-row-aligned segments.
    r1 = _round_up(HW, 8)                  # start of w2_ft
    r2 = r1 + _round_up(WpH, 8)            # start of w1_c
    r3 = r2 + _round_up(C, 8)              # start of w2_c
    wrows = r3 + _round_up(C, 8)
    wlanes = max(2 * HW, WpH, C)
    wpack = jnp.zeros((wrows, wlanes), f32)
    wpack = wpack.at[:HW, :WpH].set(w1_ft)
    wpack = wpack.at[r1:r1 + WpH, :2 * HW].set(w2_ft)
    wpack = wpack.at[r2:r2 + C, :C].set(w1_c)
    wpack = wpack.at[r3:r3 + C, :C].set(w2_c)

    # ---- batch-tile selection from device VMEM ------------------------------
    try:
        vmem_cap = int(pltpu.get_tpu_info().vmem_capacity_bytes)
    except Exception:
        vmem_cap = 64 << 20                # conservative fallback (v7x size)
    vmem_budget = vmem_cap // 2

    # Per-batch cost: double-buffered in+out blocks plus ~3 f32 full-width temps.
    per_batch = C * HW * (4 * itemsize + 3 * 4)
    bt = max(1, min(B, vmem_budget // max(per_batch, 1), 256))
    mult = 8 // math.gcd(C, 8)             # bt multiple of this => (bt*C) % 8 == 0
    if bt >= B:
        bt = B                             # whole batch in one dense block
        if B >= 4 * mult:                  # v7x megacore: keep both TCs busy
            bt = _round_up(_cdiv(B, 2), mult)
    else:
        bt = max(mult, (bt // mult) * mult)
    n_steps = _cdiv(B, bt)
    B_pad = n_steps * bt
    Rb = bt * C                            # rows per block (sublane-dense)

    # ---- batch-structure constants (0/1, exact in any float dtype) ----------
    rows = jnp.arange(Rb)
    rep = jax.nn.one_hot(rows // C, bt, dtype=dtype)     # (Rb, bt) row <- batch
    ic = jax.nn.one_hot(rows % C, C, dtype=dtype)        # (Rb, C)  row -> channel
    ssum = rep.T                                          # (bt, Rb) batch <- rows
    ic_off = _round_up(max(bt, 1), 128)                   # lane-aligned ic segment
    rep_ic = jnp.zeros((Rb, ic_off + C), dtype)
    rep_ic = rep_ic.at[:, :bt].set(rep)
    rep_ic = rep_ic.at[:, ic_off:].set(ic)

    # ---- lane-dense 2-D input (free reshape for contiguous NCHW) ------------
    x2 = x.reshape(B * C, HW)
    if B_pad != B:
        # Zero-pad so every block is full: padded batches compute finite garbage
        # that is sliced off below (avoids ragged blocks / NaN contamination).
        x2 = jnp.pad(x2, ((0, (B_pad - B) * C), (0, 0)))

    def kernel(x_ref, ssum_ref, rep_ic_ref, wpack_ref, o_ref):
        xb = x_ref[...]                                            # (Rb, HW)

        ssum_m = ssum_ref[...]                                     # (bt, Rb)
        rep_m = rep_ic_ref[:, 0:bt]                                # (Rb, bt)
        ic_m = rep_ic_ref[:, ic_off:ic_off + C]                    # (Rb, C)
        w1ft = wpack_ref[0:HW, 0:WpH]                              # (HW, W+H)
        w2ft = wpack_ref[r1:r1 + WpH, 0:2 * HW]                    # (W+H, 2*HW)
        w1c_k = wpack_ref[r2:r2 + C, 0:C]                          # (C, C)
        w2c_k = wpack_ref[r3:r3 + C, 0:C]                          # (C, C)

        # Pooled sums (all 1/C, 1/H, 1/W, 1/HW factors live in the fused weights).
        xc_sum = jnp.dot(ssum_m, xb, preferred_element_type=f32)   # (bt, HW)
        mrow = jnp.sum(xb.astype(f32), axis=1, keepdims=True)      # (Rb, 1)
        m_chan = jnp.dot(ssum_m, mrow * ic_m,
                         preferred_element_type=f32)               # (bt, C)

        # Fused freq+time SE MLP (pooling folded into fc1, broadcast into fc2).
        h_ft = jnp.maximum(
            jnp.dot(xc_sum, w1ft, preferred_element_type=f32), 0.0)    # (bt, W+H)
        logits_ft = jnp.dot(h_ft, w2ft, preferred_element_type=f32)    # (bt, 2*HW)
        s_hw = (jax.nn.sigmoid(logits_ft[:, :HW])
                + jax.nn.sigmoid(logits_ft[:, HW:]))                   # (bt, HW)

        # Channel SE MLP (compact per-batch form).
        h_c = jnp.maximum(
            jnp.dot(m_chan, w1c_k, preferred_element_type=f32), 0.0)   # (bt, C)
        logits_c = jnp.dot(h_c, w2c_k, preferred_element_type=f32)     # (bt, C)

        # Expand per-batch gates back to rows with tiny 0/1 matmuls (no reshapes).
        s_hw_rows = jnp.dot(rep_m, s_hw, preferred_element_type=f32)   # (Rb, HW)
        lc_rows = jnp.dot(rep_m, logits_c, preferred_element_type=f32)  # (Rb, C)
        s_chan_rows = jax.nn.sigmoid(
            jnp.sum(lc_rows * ic_m, axis=1, keepdims=True))             # (Rb, 1)

        scale = 1.0 + s_hw_rows + s_chan_rows                           # (Rb, HW)
        o_ref[...] = (xb * scale.astype(xb.dtype)).astype(o_ref.dtype)

    bytes_x = B_pad * C * HW * itemsize
    cost = pl.CostEstimate(
        flops=int(n_steps * (2 * bt * Rb * HW          # pooling matmul
                             + 2 * bt * HW * WpH       # fused fc1
                             + 4 * bt * WpH * HW       # fused fc2 (2*HW wide)
                             + 2 * Rb * bt * HW        # row expansion
                             + 6 * Rb * HW)),          # elementwise tail
        transcendentals=int(n_steps * (2 * bt * HW + bt * C + Rb)),
        bytes_accessed=int(2 * bytes_x
                           + 4 * (wpack.size + ssum.size + rep_ic.size)),
    )
    vmem_limit = int(min(vmem_cap, 128 << 20)) * 3 // 4

    out2 = pl.pallas_call(
        kernel,
        out_shape=jax.ShapeDtypeStruct((B_pad * C, HW), dtype),
        grid_spec=pltpu.PrefetchScalarGridSpec(
            num_scalar_prefetch=0,
            grid=(n_steps,),
            in_specs=[
                pl.BlockSpec((Rb, HW), lambda i: (i, 0)),
                pl.BlockSpec(ssum.shape, lambda i: (0, 0)),
                pl.BlockSpec(rep_ic.shape, lambda i: (0, 0)),
                pl.BlockSpec(wpack.shape, lambda i: (0, 0)),
            ],
            out_specs=pl.BlockSpec((Rb, HW), lambda i: (i, 0)),
        ),
        compiler_params=pltpu.CompilerParams(
            dimension_semantics=(("parallel",) if n_steps > 1
                                 else ("arbitrary",)),
            vmem_limit_bytes=vmem_limit,
        ),
        cost_estimate=cost,
    )(x2, ssum, rep_ic, wpack)

    out2 = out2[:B * C]
    return out2.reshape(B, C, H, W)


def se_module_combine_v2_ref(x, w1f, w2f, w1t, w2t, w1c, w2c):
    """Pure-JAX reference mirroring the PyTorch forward exactly."""
    m_freq = x.mean(axis=(1, 2))   # (B, W)  -- SEModule  : transpose(1,3) + avgpool
    m_time = x.mean(axis=(1, 3))   # (B, H)  -- SEModule2 : transpose(1,2) + avgpool
    m_chan = x.mean(axis=(2, 3))   # (B, C)  -- SEModule_naive

    def se(m, w1, w2):
        return jax.nn.sigmoid(jnp.maximum(m @ w1.T, 0.0) @ w2.T)

    s_freq = se(m_freq, w1f, w2f)  # (B, W)
    s_time = se(m_time, w1t, w2t)  # (B, H)
    s_chan = se(m_chan, w1c, w2c)  # (B, C)

    scale = (1.0
             + s_freq[:, None, None, :]
             + s_time[:, None, :, None]
             + s_chan[:, :, None, None])
    return x * scale


def _xavier_uniform(key, shape):
    fan_out, fan_in = shape
    bound = (6.0 / (fan_in + fan_out)) ** 0.5
    return jax.random.uniform(key, shape, jnp.float32, -bound, bound)


if __name__ == "__main__":
    # NCHW with fea_ch = C = 4, time_ch = H = 8, freq_ch = W = 16, batch = 2.
    B, C, H, W = 2, 4, 8, 16
    key = jax.random.PRNGKey(0)
    kx, k1, k2, k3, k4, k5, k6 = jax.random.split(key, 7)

    x = jax.random.normal(kx, (B, C, H, W), jnp.float32)

    # Deterministic synthetic weights (xavier-uniform-style init, no bias).
    w1f = _xavier_uniform(k1, (W, W))   # freq_se.fc1
    w2f = _xavier_uniform(k2, (W, W))   # freq_se.fc2
    w1t = _xavier_uniform(k3, (H, H))   # time_se.fc1
    w2t = _xavier_uniform(k4, (H, H))   # time_se.fc2
    w1c = _xavier_uniform(k5, (C, C))   # total_se.fc1
    w2c = _xavier_uniform(k6, (C, C))   # total_se.fc2

    out = se_module_combine_v2(x, w1f, w2f, w1t, w2t, w1c, w2c)
    out = jax.block_until_ready(out)

    ref = se_module_combine_v2_ref(x, w1f, w2f, w1t, w2t, w1c, w2c)
    assert out.shape == (B, C, H, W)
    assert jnp.allclose(out, ref, atol=1e-4, rtol=1e-4), "mismatch vs reference"

    # TODO(synk): the PyTorch module also stashes the three gate maps in
    # self.maps (a Python side effect); only the summed output is returned here.

    print("KERNEL_OK")
</pallas_src>

<mosaic_0001>
module attributes {stable_mosaic.version = 11 : i64} {
  func.func @kernel(%arg0: i32, %arg1: memref<8x128xf32, #tpu.memory_space<vmem>>, %arg2: memref<2x8xf32, #tpu.memory_space<vmem>>, %arg3: memref<8x132xf32, #tpu.memory_space<vmem>>, %arg4: memref<168x256xf32, #tpu.memory_space<vmem>>, %arg5: memref<8x128xf32, #tpu.memory_space<vmem>>) attributes {dimension_semantics = [#tpu.dimension_semantics<arbitrary>], iteration_bounds = array<i64: 1>, scalar_prefetch = 0 : i64, scratch_operands = 0 : i64, tpu.core_type = #tpu.core_type<tc>, window_params = [{transform_indices = @transform_0, window_bounds = array<i64: 8, 128>}, {pipeline_mode = #tpu.pipeline_mode<synchronous>, transform_indices = @transform_1, window_bounds = array<i64: 2, 8>}, {pipeline_mode = #tpu.pipeline_mode<synchronous>, transform_indices = @transform_2, window_bounds = array<i64: 8, 132>}, {pipeline_mode = #tpu.pipeline_mode<synchronous>, transform_indices = @transform_3, window_bounds = array<i64: 168, 256>}, {transform_indices = @transform_4, window_bounds = array<i64: 8, 128>}]} {
    %c0 = arith.constant 0 : index
    %c0_0 = arith.constant 0 : index
    %0 = vector.load %arg1[%c0, %c0_0] : memref<8x128xf32, #tpu.memory_space<vmem>>, vector<8x128xf32>
    %c0_1 = arith.constant 0 : index
    %c0_2 = arith.constant 0 : index
    %1 = vector.load %arg2[%c0_1, %c0_2] : memref<2x8xf32, #tpu.memory_space<vmem>>, vector<2x8xf32>
    %c0_3 = arith.constant 0 : index
    %c0_4 = arith.constant 0 : index
    %2 = vector.load %arg3[%c0_3, %c0_4] : memref<8x132xf32, #tpu.memory_space<vmem>>, vector<8x2xf32>
    %c0_5 = arith.constant 0 : index
    %c128 = arith.constant 128 : index
    %3 = vector.load %arg3[%c0_5, %c128] : memref<8x132xf32, #tpu.memory_space<vmem>>, vector<8x4xf32>
    %c0_6 = arith.constant 0 : index
    %c0_7 = arith.constant 0 : index
    %4 = vector.load %arg4[%c0_6, %c0_7] : memref<168x256xf32, #tpu.memory_space<vmem>>, vector<128x24xf32>
    %c128_8 = arith.constant 128 : index
    %c0_9 = arith.constant 0 : index
    %5 = vector.load %arg4[%c128_8, %c0_9] : memref<168x256xf32, #tpu.memory_space<vmem>>, vector<24x256xf32>
    %c152 = arith.constant 152 : index
    %c0_10 = arith.constant 0 : index
    %6 = vector.load %arg4[%c152, %c0_10] : memref<168x256xf32, #tpu.memory_space<vmem>>, vector<4x4xf32>
    %c160 = arith.constant 160 : index
    %c0_11 = arith.constant 0 : index
    %7 = vector.load %arg4[%c160, %c0_11] : memref<168x256xf32, #tpu.memory_space<vmem>>, vector<4x4xf32>
    %cst = arith.constant dense<0.000000e+00> : vector<2x128xf32>
    %8 = tpu.matmul %1, %0, %cst {dimension_numbers = #tpu.dot_dimension_numbers<[1], [0], [0], [1], [0, 0, 1, 1], [], []>} : vector<2x8xf32>, vector<8x128xf32>, vector<2x128xf32> -> vector<2x128xf32>
    %cst_12 = arith.constant dense<0.000000e+00> : vector<8xf32>
    %9 = vector.multi_reduction <add>, %0, %cst_12 [1] : vector<8x128xf32> to vector<8xf32>
    %10 = vector.shape_cast %9 : vector<8xf32> to vector<8x1xf32>
    %11 = vector.broadcast %10 : vector<8x1xf32> to vector<8x4xf32>
    %12 = arith.mulf %11, %3 : vector<8x4xf32>
    %cst_13 = arith.constant dense<0.000000e+00> : vector<2x4xf32>
    %13 = tpu.matmul %1, %12, %cst_13 {dimension_numbers = #tpu.dot_dimension_numbers<[1], [0], [0], [1], [0, 0, 1, 1], [], []>} : vector<2x8xf32>, vector<8x4xf32>, vector<2x4xf32> -> vector<2x4xf32>
    %cst_14 = arith.constant dense<0.000000e+00> : vector<2x24xf32>
    %14 = tpu.matmul %8, %4, %cst_14 {dimension_numbers = #tpu.dot_dimension_numbers<[1], [0], [0], [1], [0, 0, 1, 1], [], []>} : vector<2x128xf32>, vector<128x24xf32>, vector<2x24xf32> -> vector<2x24xf32>
    %cst_15 = arith.constant 0.000000e+00 : f32
    %15 = vector.broadcast %cst_15 : f32 to vector<2x24xf32>
    %16 = arith.maximumf %14, %15 : vector<2x24xf32>
    %cst_16 = arith.constant dense<0.000000e+00> : vector<2x256xf32>
    %17 = tpu.matmul %16, %5, %cst_16 {dimension_numbers = #tpu.dot_dimension_numbers<[1], [0], [0], [1], [0, 0, 1, 1], [], []>} : vector<2x24xf32>, vector<24x256xf32>, vector<2x256xf32> -> vector<2x256xf32>
    %18 = vector.extract_strided_slice %17 {offsets = [0, 0], sizes = [2, 128], strides = [1, 1]} : vector<2x256xf32> to vector<2x128xf32>
    %19 = arith.negf %18 : vector<2x128xf32>
    %20 = math.exp %19 : vector<2x128xf32>
    %cst_17 = arith.constant 1.000000e+00 : f32
    %21 = vector.broadcast %cst_17 : f32 to vector<2x128xf32>
    %22 = arith.addf %21, %20 : vector<2x128xf32>
    %23 = arith.divf %21, %22 : vector<2x128xf32>
    %24 = vector.extract_strided_slice %17 {offsets = [0, 128], sizes = [2, 128], strides = [1, 1]} : vector<2x256xf32> to vector<2x128xf32>
    %25 = arith.negf %24 : vector<2x128xf32>
    %26 = math.exp %25 : vector<2x128xf32>
    %cst_18 = arith.constant 1.000000e+00 : f32
    %27 = vector.broadcast %cst_18 : f32 to vector<2x128xf32>
    %28 = arith.addf %27, %26 : vector<2x128xf32>
    %29 = arith.divf %27, %28 : vector<2x128xf32>
    %30 = arith.addf %23, %29 : vector<2x128xf32>
    %cst_19 = arith.constant dense<0.000000e+00> : vector<2x4xf32>
    %31 = tpu.matmul %13, %6, %cst_19 {dimension_numbers = #tpu.dot_dimension_numbers<[1], [0], [0], [1], [0, 0, 1, 1], [], []>} : vector<2x4xf32>, vector<4x4xf32>, vector<2x4xf32> -> vector<2x4xf32>
    %cst_20 = arith.constant 0.000000e+00 : f32
    %32 = vector.broadcast %cst_20 : f32 to vector<2x4xf32>
    %33 = arith.maximumf %31, %32 : vector<2x4xf32>
    %cst_21 = arith.constant dense<0.000000e+00> : vector<2x4xf32>
    %34 = tpu.matmul %33, %7, %cst_21 {dimension_numbers = #tpu.dot_dimension_numbers<[1], [0], [0], [1], [0, 0, 1, 1], [], []>} : vector<2x4xf32>, vector<4x4xf32>, vector<2x4xf32> -> vector<2x4xf32>
    %cst_22 = arith.constant dense<0.000000e+00> : vector<8x128xf32>
    %35 = tpu.matmul %2, %30, %cst_22 {dimension_numbers = #tpu.dot_dimension_numbers<[1], [0], [0], [1], [0, 0, 1, 1], [], []>} : vector<8x2xf32>, vector<2x128xf32>, vector<8x128xf32> -> vector<8x128xf32>
    %cst_23 = arith.constant dense<0.000000e+00> : vector<8x4xf32>
    %36 = tpu.matmul %2, %34, %cst_23 {dimension_numbers = #tpu.dot_dimension_numbers<[1], [0], [0], [1], [0, 0, 1, 1], [], []>} : vector<8x2xf32>, vector<2x4xf32>, vector<8x4xf32> -> vector<8x4xf32>
    %37 = arith.mulf %36, %3 : vector<8x4xf32>
    %cst_24 = arith.constant dense<0.000000e+00> : vector<8xf32>
    %38 = vector.multi_reduction <add>, %37, %cst_24 [1] : vector<8x4xf32> to vector<8xf32>
    %39 = vector.shape_cast %38 : vector<8xf32> to vector<8x1xf32>
    %40 = arith.negf %39 : vector<8x1xf32>
    %41 = math.exp %40 : vector<8x1xf32>
    %cst_25 = arith.constant 1.000000e+00 : f32
    %42 = vector.broadcast %cst_25 : f32 to vector<8x1xf32>
    %43 = arith.addf %42, %41 : vector<8x1xf32>
    %44 = arith.divf %42, %43 : vector<8x1xf32>
    %cst_26 = arith.constant 1.000000e+00 : f32
    %45 = vector.broadcast %cst_26 : f32 to vector<8x128xf32>
    %46 = arith.addf %45, %35 : vector<8x128xf32>
    %47 = vector.broadcast %44 : vector<8x1xf32> to vector<8x128xf32>
    %48 = arith.addf %46, %47 : vector<8x128xf32>
    %49 = arith.mulf %0, %48 : vector<8x128xf32>
    %c0_27 = arith.constant 0 : index
    %c0_28 = arith.constant 0 : index
    %50 = vector.load %arg5[%c0_27, %c0_28] : memref<8x128xf32, #tpu.memory_space<vmem>>, vector<8x128xf32>
    tpu.vector_store %arg5[%c0_27, %c0_28], %49 {strides = array<i32>} : memref<8x128xf32, #tpu.memory_space<vmem>>, vector<8x128xf32>,
    return
  }
  func.func @transform_0(%arg0: i32) -> (i32, i32) {
    %c0_i32 = arith.constant 0 : i32
    %c0_i32_0 = arith.constant 0 : i32
    return %arg0, %c0_i32 : i32, i32
  }
  func.func @transform_1(%arg0: i32) -> (i32, i32) {
    %c0_i32 = arith.constant 0 : i32
    %c0_i32_0 = arith.constant 0 : i32
    %c0_i32_1 = arith.constant 0 : i32
    return %c0_i32, %c0_i32_0 : i32, i32
  }
  func.func @transform_2(%arg0: i32) -> (i32, i32) {
    %c0_i32 = arith.constant 0 : i32
    %c0_i32_0 = arith.constant 0 : i32
    %c0_i32_1 = arith.constant 0 : i32
    return %c0_i32, %c0_i32_0 : i32, i32
  }
  func.func @transform_3(%arg0: i32) -> (i32, i32) {
    %c0_i32 = arith.constant 0 : i32
    %c0_i32_0 = arith.constant 0 : i32
    %c0_i32_1 = arith.constant 0 : i32
    return %c0_i32, %c0_i32_0 : i32, i32
  }
  func.func @transform_4(%arg0: i32) -> (i32, i32) {
    %c0_i32 = arith.constant 0 : i32
    %c0_i32_0 = arith.constant 0 : i32
    return %arg0, %c0_i32 : i32, i32
  }
}

</mosaic_0001>

<bundles_post_ra>
// kernel: tpu_custom_call.1
= control target key start
LH: loop header
LB: loop body
LE: loop exit
PB: predicated region body
PF: predicated region fallthrough
CT: control target
= control target key end

     0   :  { %9 = vsyncpa [#allocation3], 0  ;;  %s630_s0 = inlined_call_operand.hbm [shape: f32[8,128], index: 0, kind: input, shape index: {}]   ;;  %s631_s1 = inlined_call_operand.hbm [shape: f32[2,8], index: 1, kind: input, shape index: {}]   ;;  %s632_s2 = inlined_call_operand.hbm [shape: f32[8,132], index: 2, kind: input, shape index: {}]   ;;  %s633_s3 = inlined_call_operand.hbm [shape: f32[168,256], index: 3, kind: input, shape index: {}]   ;;  %s634_s4 = inlined_call_operand.hbm [shape: f32[8,128], index: 4, kind: output, shape index: {}]  }
   0x1   :  { %10 = vsyncpa [#allocation6], 0 }
   0x2   :  { %11 = vsyncpa [#allocation9], 0  ;;  %s29_s17 = sshll.u32 %s631_s1, 4  ;;  %s30_s17 = int_to_ptr.hbm [resolvable:$true] %s29_s17 }
   0x3   :  { %12 = vsyncpa [#allocation4], 0  ;;  %s567_s18 = smov [#allocation5]   ;;  %s18_s22 = sshll.u32 %s630_s0, 4  ;;  %s19_s22 = int_to_ptr.hbm [resolvable:$true] %s18_s22 }
   0x4   :  { %s31_s19 = sshll.u32 %s567_s18, 4  ;;  %s568_s23 = smov [#allocation2]   ;;  %s32_s19 = int_to_ptr.vmem [resolvable:$true] %s31_s19 }
   0x5   :  { %34 = dma.hbm_to_vmem [thread:$0]  %s30_s17, 32, %s32_s19, [#allocation6]  }
   0x6   :  { %s20_s24 = sshll.u32 %s568_s23, 4  ;;  %s40_s27 = sshll.u32 %s632_s2, 4  ;;  %s21_s24 = int_to_ptr.vmem [resolvable:$true] %s20_s24  ;;  %s41_s27 = int_to_ptr.hbm [resolvable:$true] %s40_s27 }
   0x7   :  { %23 = dma.hbm_to_vmem [thread:$0]  %s19_s22, 128, %s21_s24, [#allocation3]  }
   0x8   :  { %s50_s29 = sshll.u32 %s633_s3, 4  ;;  %s569_s30 = smov [#allocation7]   ;;  %s51_s29 = int_to_ptr.hbm [resolvable:$true] %s50_s29 }
   0x9   :  { %s42_s5 = sshll.u32 %s569_s30, 4  ;;  %s570_s0 = smov [#allocation8]   ;;  %s43_s5 = int_to_ptr.vmem [resolvable:$true] %s42_s5 }
   0xa   :  { %45 = dma.hbm_to_vmem [thread:$0]  %s41_s27, 256, %s43_s5, [#allocation6]  }
   0xb   :  { %s52_s6 = sshll.u32 %s570_s0, 4  ;;  %s571_s7 = smov 256   ;;  %s53_s6 = int_to_ptr.vmem [resolvable:$true] %s52_s6 }
   0xc   :  { %s572_s8 = smov 16  }
   0xd   :  { %58 = dma.hbm_to_vmem [thread:$0]  %s51_s29, 5376, %s53_s6, [#allocation9], %s571_s7, %s571_s7, %s572_s8  }
   0xe   :  { %559 = dma.done.wait [#allocation3], 128  }
   0xf   :  { %560 = vsyncadd [#allocation3], 4294967168 }
  0x10   :  { %561 = dma.done.wait [#allocation6], 288  }
  0x11   :  { %562 = vsyncadd [#allocation6], 4294967008 }
  0x12   :  { %563 = dma.done.wait [#allocation9], 5376  }
  0x13   :  { %564 = vsyncadd [#allocation9], 4294961920  ;;  %vm103_vm0 = vcmask 64512   ;;  %v611_v0 = vld [vmem:[#allocation2] sm:$0xff]  ;;  %v76_v1 = vld [vmem:[#allocation5] sm:$0x3] }
  0x14   :  { %127 = vadd.xlane.f32.xlu0 %v611_v0  ;;  %122 = vmatpush.msra.mxu0 %v611_v0  ;;  %v94_v2 = vld [vmem:[#allocation8 + $0xf0] sm:$0xff]  ;;  %v93_v3 = vld [vmem:[#allocation8 + $0xe0] sm:$0xff]  ;;  %v616_v16 = vld [vmem:[#allocation7 + $0x8] sm:$0xff]  ;;  %vm258_vm1 = vcmask 1043456   ;;  %vm254_vm2 = vcmask 31744   ;;  %vm171_vm3 = vcmask 195584  }
  0x15   :  { %405 = vmatmul.msk.f32.vlgmr.msra.gmra.mxu0 %vm103_vm0, %v76_v1  ;;  %150 = vmatpush.msra.mxu2 %v94_v2  ;;  %v92_v4 = vld [vmem:[#allocation8 + $0xd0] sm:$0xff]  ;;  %v91_v5 = vld [vmem:[#allocation8 + $0xc0] sm:$0xff]  ;;  %v100_v26 = vld [vmem:[#allocation8 + $0x128] sm:$0xff]  ;;  %vm313_vm12 = vcmask 1041408   ;;  %vm309_vm13 = vcmask 15360   ;;  %s573_s2 = smov [#allocation10]  }
  0x16   :  { %v90_v6 = vld [vmem:[#allocation8 + $0xb0] sm:$0xff]  ;;  %v89_v7 = vld [vmem:[#allocation8 + $0xa0] sm:$0xff]  ;;  %v98_v27 = vld [vmem:[#allocation8 + $0x118] sm:$0xff]  ;;  %208 = vmatpush.msrb.mxu0 %v100_v26  ;;  %s391_s3 = sshll.u32 %s573_s2, 4  ;;  %s393_s11 = sshll.u32 %s634_s4, 4  ;;  %s392_s3 = int_to_ptr.vmem [resolvable:$true] %s391_s3  ;;  %s394_s11 = int_to_ptr.hbm [resolvable:$true] %s393_s11 }
  0x17   :  { %151 = vmatpush.msra.mxu2 %v93_v3  ;;  %v88_v8 = vld [vmem:[#allocation8 + $0x90] sm:$0xff]  ;;  %v87_v9 = vld [vmem:[#allocation8 + $0x80] sm:$0xff]  ;;  %v96_v28 = vld [vmem:[#allocation8 + $0x108] sm:$0xff] }
  0x18   :  { %v86_v10 = vld [vmem:[#allocation8 + $0x70] sm:$0xff]  ;;  %v85_v11 = vld [vmem:[#allocation8 + $0x60] sm:$0xff]  ;;  %209 = vmatpush.msrb.mxu0 %v98_v27 }
  0x19   :  { %152 = vmatpush.msra.mxu2 %v92_v4  ;;  %v84_v12 = vld [vmem:[#allocation8 + $0x50] sm:$0xff]  ;;  %v83_v13 = vld [vmem:[#allocation8 + $0x40] sm:$0xff] }
  0x1a   :  { %v82_v14 = vld [vmem:[#allocation8 + $0x30] sm:$0xff]  ;;  %v81_v15 = vld [vmem:[#allocation8 + $0x20] sm:$0xff]  ;;  %210 = vmatpush.msrb.mxu0 %v96_v28 }
  0x1b   :  { %153 = vmatpush.msra.mxu2 %v91_v5  ;;  %v80_v17 = vld [vmem:[#allocation8 + $0x10] sm:$0xff]  ;;  %v79_v19 = vld [vmem:[#allocation8] sm:$0xff] }
  0x1c   :  { %v101_v22 = vld [vmem:[#allocation8 + $0x130] sm:$0xf]  ;;  %v99_v23 = vld [vmem:[#allocation8 + $0x120] sm:$0xff] }
  0x1d   :  { %154 = vmatpush.msra.mxu2 %v90_v6  ;;  %188 = vmatpush.msra.mxu3 %v99_v23  ;;  %v97_v24 = vld [vmem:[#allocation8 + $0x110] sm:$0xff]  ;;  %v95_v25 = vld [vmem:[#allocation8 + $0x100] sm:$0xff] }
  0x1e   :  { %v102_v32 = vld [vmem:[#allocation8 + $0x140] sm:$0xf] }
  0x1f   :  { %155 = vmatpush.msra.mxu2 %v89_v7  ;;  %189 = vmatpush.msra.mxu3 %v97_v24 }
  0x21   :  { %156 = vmatpush.msra.mxu2 %v88_v8  ;;  %190 = vmatpush.msra.mxu3 %v95_v25 }
  0x23   :  { %157 = vmatpush.msra.mxu2 %v87_v9  ;;  %413 = vmatpush.msk.msrb.mxu3 %vm258_vm1, %v102_v32 }
  0x25   :  { %158 = vmatpush.msra.mxu2 %v86_v10 }
  0x27   :  { %159 = vmatpush.msra.mxu2 %v85_v11 }
  0x29   :  { %160 = vmatpush.msra.mxu2 %v84_v12 }
  0x2b   :  { %161 = vmatpush.msra.mxu2 %v83_v13 }
  0x2d   :  { %162 = vmatpush.msra.mxu2 %v82_v14 }
  0x2f   :  { %163 = vmatpush.msra.mxu2 %v81_v15 }
  0x31   :  { %164 = vmatpush.msra.mxu2 %v80_v17 }
  0x33   :  { %165 = vmatpush.msra.mxu2 %v79_v19 }
  0x87   :  { %v128_v18 = vpop.xlane.xlu0 %127 }
  0x88   :  { %v129_v20 = vmul.f32 %v128_v18, %v616_v16 }
  0x8a   :  { %145 = vmatpush.msra.mxu1 %v129_v20 }
  0x8b   :  { %406 = vmatmul.msk.f32.vlgmr.msra.gmra.mxu1 %vm103_vm0, %v76_v1  ;;  %v77_v1 = vld [vmem:[#allocation7] sm:$0xff] }
  0x8c   :  { %411 = vmatpush.msk.msrb.mxu1 %vm258_vm1, %v101_v22 }
  0x92   :  { %v124_v21 = vpop.f32.mrf.mxu0 }
  0x93   :  { %166 = vmatmul.f32.vlgmr.msra.gmra.mxu2 %v124_v21 }
 0x108   :  { %v147_v29 = vpop.f32.mrf.mxu1 }
 0x109   :  { %412 = vmatmul.msk.f32.vlgmr.msrb.gmra.mxu1 %vm254_vm2, %v147_v29 }
 0x116   :  { %v167_v30 = vpop.f32.mrf.mxu2 }
 0x117   :  { %v170_v31 = vmax.f32 %v167_v30, 0.0 }
 0x119   :  { %407 = vmatmul.msk.f32.vlgmr.msra.gmra.mxu3 %vm171_vm3, %v170_v31  ;;  %408 = vmatmul.msk.f32.vlgmr.msrb.gmra.mxu0 %vm171_vm3, %v170_v31 }
 0x186   :  { %v279_v33 = vpop.f32.mrf.mxu1 }
 0x187   :  { %v282_v34 = vmax.f32 %v279_v33, 0.0 }
 0x189   :  { %414 = vmatmul.msk.f32.vlgmr.msrb.gmra.mxu3 %vm254_vm2, %v282_v34 }
 0x196   :  { %v212_v35 = vpop.f32.mrf.mxu0 }
 0x197   :  { %v410_v37 = vmul.f32 -1.442695, %v212_v35 }
 0x199   :  { %427 = vpow2.f32 %v410_v37 }
 0x19c   :  { %v192_v36 = vpop.f32.mrf.mxu3 }
 0x19d   :  { %v409_v38 = vmul.f32 -1.442695, %v192_v36 }
 0x19f   :  { %429 = vpow2.f32 %v409_v38  ;;  %v428_v39 = vpop.eup %427 }
 0x1a0   :  { %v237_v41 = vadd.f32 1.0, %v428_v39 }
 0x1a2   :  { %431 = vrcp.f32 %v237_v41  ;;  %vm243_vm4 = vweird.f32 %v237_v41  ;;  %v249_v50 = vand.u32 2147483648, %v237_v41  ;;  %v247_v55 = vand.u32 2147483647, %v237_v41 }
 0x1a4   :  { %v250_v56 = vor.u32 1.1754944e-38, %v249_v50  ;;  %vm248_vm11 = vcmp.eq.f32.partialorder %v247_v55, 8.507059e+37 }
 0x1a5   :  { %v430_v40 = vpop.eup %429 }
 0x1a6   :  { %v218_v42 = vadd.f32 1.0, %v430_v40 }
 0x1a8   :  { %433 = vrcp.f32 %v218_v42  ;;  %v432_v43 = vpop.eup %431  ;;  %v230_v49 = vand.u32 2147483648, %v218_v42  ;;  %vm224_vm6 = vweird.f32 %v218_v42  ;;  %v228_v53 = vand.u32 2147483647, %v218_v42 }
 0x1a9   :  { %v239_v46 = vmul.f32 %v432_v43, %v237_v41  ;;  %vm244_vm5 = vweird.f32 %v432_v43 }
 0x1aa   :  { %vm245_vm8 = vmor %vm243_vm4, %vm244_vm5  ;;  %v231_v54 = vor.u32 1.1754944e-38, %v230_v49  ;;  %vm229_vm10 = vcmp.eq.f32.partialorder %v228_v53, 8.507059e+37 }
 0x1ab   :  { %v240_v48 = vsub.f32 1.0, %v239_v46 }
 0x1ad   :  { %v241_v52 = vmul.f32 %v432_v43, %v240_v48 }
 0x1ae   :  { %v434_v44 = vpop.eup %433 }
 0x1af   :  { %v220_v45 = vmul.f32 %v434_v44, %v218_v42  ;;  %vm225_vm7 = vweird.f32 %v434_v44  ;;  %v242_v58 = vadd.f32 %v432_v43, %v241_v52 }
 0x1b0   :  { %vm226_vm9 = vmor %vm224_vm6, %vm225_vm7 }
 0x1b1   :  { %v221_v47 = vsub.f32 1.0, %v220_v45  ;;  %v246_v60 = vsel %vm245_vm8, %v432_v43, %v242_v58 }
 0x1b2   :  { %v251_v62 = vsel %vm248_vm11, %v250_v56, %v246_v60 }
 0x1b3   :  { %v222_v51 = vmul.f32 %v434_v44, %v221_v47 }
 0x1b5   :  { %v223_v57 = vadd.f32 %v434_v44, %v222_v51 }
 0x1b7   :  { %v227_v59 = vsel %vm226_vm9, %v434_v44, %v223_v57 }
 0x1b8   :  { %v232_v61 = vsel %vm229_vm10, %v231_v54, %v227_v59 }
 0x1b9   :  { %v253_v63 = vadd.f32 %v251_v62, %v232_v61 }
 0x1bb   :  { %418 = vmatpush.msk.msra.mxu1 %vm313_vm12, %v253_v63 }
 0x1bc   :  { %419 = vmatmul.msk.f32.vlgmr.msra.gmra.mxu1 %vm309_vm13, %v77_v1 }
 0x20c   :  { %v306_v2 = vpop.f32.mrf.mxu3 }
 0x20d   :  { %415 = vmatpush.msk.msra.mxu0 %vm313_vm12, %v306_v2 }
 0x20e   :  { %416 = vmatmul.msk.f32.vlgmr.msra.gmra.mxu0 %vm309_vm13, %v77_v1 }
 0x239   :  { %v380_v14 = vpop.f32.mrf.mxu1 }
 0x28b   :  { %v334_v3 = vpop.f32.mrf.mxu0 }
 0x28c   :  { %v337_v4 = vmul.f32 %v334_v3, %v616_v16  ;;  %v381_v16 = vadd.f32 1.0, %v380_v14 }
 0x28e   :  { %v338_v5 = vsel %vm254_vm2, %v337_v4, 0.0 }
 0x28f   :  { %339 = vadd.xlane.f32.xlu0 %v338_v5 }
 0x302   :  { %v340_v6 = vpop.xlane.xlu0 %339 }
 0x303   :  { %v417_v7 = vmul.f32 -1.442695, %v340_v6 }
 0x305   :  { %435 = vpow2.f32 %v417_v7 }
 0x30b   :  { %v436_v8 = vpop.eup %435 }
 0x30c   :  { %v344_v9 = vadd.f32 1.0, %v436_v8 }
 0x30e   :  { %437 = vrcp.f32 %v344_v9  ;;  %v356_v13 = vand.u32 2147483648, %v344_v9  ;;  %v354_v17 = vand.u32 2147483647, %v344_v9  ;;  %vm350_vm15 = vweird.f32 %v344_v9 }
 0x310   :  { %v357_v19 = vor.u32 1.1754944e-38, %v356_v13  ;;  %vm355_vm1 = vcmp.eq.f32.partialorder %v354_v17, 8.507059e+37 }
 0x314   :  { %v438_v10 = vpop.eup %437 }
 0x315   :  { %v346_v11 = vmul.f32 %v438_v10, %v344_v9  ;;  %vm351_vm14 = vweird.f32 %v438_v10 }
 0x316   :  { %vm352_vm0 = vmor %vm350_vm15, %vm351_vm14 }
 0x317   :  { %v347_v12 = vsub.f32 1.0, %v346_v11 }
 0x319   :  { %v348_v15 = vmul.f32 %v438_v10, %v347_v12 }
 0x31b   :  { %v349_v18 = vadd.f32 %v438_v10, %v348_v15 }
 0x31d   :  { %v353_v20 = vsel %vm352_vm0, %v438_v10, %v349_v18 }
 0x31e   :  { %v358_v21 = vsel %vm355_vm1, %v357_v19, %v353_v20 }
 0x31f   :  { %v383_v22 = vadd.f32 %v381_v16, %v358_v21 }
 0x321   :  { %v384_v23 = vmul.f32 %v383_v22, %v611_v0 }
 0x323   :  { %385 = vst [vmem:[#allocation10] sm:$0xff] %v384_v23 }
 0x324   :  { %396 = dma.vmem_to_hbm [thread:$0]  %s392_s3, 128, %s394_s11, [#allocation4]  }
 0x325   :  { %565 = dma.done.wait [#allocation4], 128  }
 0x326   :  { %566 = vsyncadd [#allocation4], 4294967168 }
 0x327   :  { %401 = vsyncpa [#allocation3], 1 }
 0x328   :  { %402 = vsyncpa [#allocation6], 1 }
 0x329   :  { %403 = vsyncpa [#allocation9], 1 }
 0x32a   :  { %404 = vsyncpa [#allocation4], 1 }

</bundles_post_ra>
